<compile_context>
chip_gen: v6e
topology: v6e:2x2x1
jax: 0.10.0
libtpu: 0.0.40
codegen_flags: <defaults>
</compile_context>

<pallas_src>
import jax
import jax.numpy as jnp
from jax.experimental import pallas as pl
from jax.experimental.pallas import tpu as pltpu


def _card_knowledge_kernel(thresh_ref, plaus_ref, out_ref):
    """Zero card slots past each hand's length; lane-dense block store.

    thresh_ref : VMEM i32[(block_rows, 1)]      hand_len * (C*R) per row
    plaus_ref  : VMEM f32[(block_rows, lanes)]  lane-padded plausibility rows
    out_ref    : VMEM f32[(block_rows, lanes)]
    """
    rows, lanes = out_ref.shape
    lane_id = jax.lax.broadcasted_iota(jnp.int32, (rows, lanes), 1)
    # Element j of a row belongs to card slot j // (C*R); it is real iff
    # j < hand_len*(C*R).  Layout-padding lanes (j >= H*C*R) always fail the
    # test (threshold <= H*C*R), so they come out as exact zeros.
    out_ref[...] = jnp.where(lane_id < thresh_ref[...], plaus_ref[...], 0.0)


def card_knowledge_encoder_batched(plausible, hand_lengths, *, block_rows=512):
    """Batched CardKnowledgeEncoder.forward.

    Args:
      plausible:    f32[B, P, H, C, R] plausibility bitmaps (padded card slots
                    may hold garbage; they get zeroed).
      hand_lengths: i32[B, P] number of real cards in each player's hand.
      block_rows:   row-tile size (multiple of 8); ~512 rows x 128 lanes f32
                    (~256 KiB/buffer) is plenty for an HBM-bound select.

    Returns:
      f32[B, P*H*C*R]  -- one flat knowledge vector per observation.
    """
    B, P, H, C, R = plausible.shape
    CR = C * R
    HCR = H * CR
    rows = B * P
    lanes = pl.cdiv(HCR, 128) * 128            # lane-dense last dim

    rows8 = ((rows + 7) // 8) * 8
    block_rows = max(8, (min(block_rows, rows8) // 8) * 8)
    n_blocks = pl.cdiv(rows, block_rows)
    rows_padded = n_blocks * block_rows

    # Lane-dense, sublane-aligned views (phantom rows get threshold 0 and are
    # sliced off below, so no garbage can leak through).
    plaus2d = jnp.pad(
        plausible.reshape(rows, HCR).astype(jnp.float32),
        ((0, rows_padded - rows), (0, lanes - HCR)))
    thresh = hand_lengths.reshape(rows).astype(jnp.int32) * CR
    thresh = jnp.pad(thresh, (0, rows_padded - rows)).reshape(rows_padded, 1)

    out = pl.pallas_call(
        _card_knowledge_kernel,
        out_shape=jax.ShapeDtypeStruct((rows_padded, lanes), jnp.float32),
        grid=(n_blocks,),
        in_specs=[
            pl.BlockSpec((block_rows, 1), lambda i: (i, 0)),       # thresholds
            pl.BlockSpec((block_rows, lanes), lambda i: (i, 0)),   # plausible
        ],
        out_specs=pl.BlockSpec((block_rows, lanes), lambda i: (i, 0)),
        compiler_params=pltpu.CompilerParams(
            dimension_semantics=("parallel",)),
    )(thresh, plaus2d)

    # Drop layout padding; row-major (player, card, color, rank) flatten per
    # observation matches torch.stack([...]).flatten().
    return out[:rows, :HCR].reshape(B, P * HCR)


def card_knowledge_encoder(plausible, hand_lengths, *, num_players, num_colors,
                           num_ranks, hand_size):
    """Single-observation module API (forward-pass semantics of the nn.Module).

    Args:
      plausible:    f32[num_players, hand_size, num_colors, num_ranks]
      hand_lengths: i32[num_players]

    Returns:
      f32[num_players * hand_size * num_colors * num_ranks]
    """
    P, H, C, R = plausible.shape
    assert (P, H, C, R) == (num_players, hand_size, num_colors, num_ranks)
    return card_knowledge_encoder_batched(
        plausible[None], hand_lengths[None]).reshape(-1)


def _reference_batched(plausible, hand_lengths):
    """Pure-JAX reference mimicking the PyTorch loop/stack/flatten per obs."""
    B, P, H, C, R = plausible.shape
    card_ids = jnp.arange(H)[None, None, :, None, None]           # (1,1,H,1,1)
    mask = card_ids < hand_lengths[:, :, None, None, None]        # (B,P,H,1,1)
    return jnp.where(mask, plausible, 0.0).reshape(B, -1)


if __name__ == "__main__":
    # Small, Hanabi-like config: 2 players, 5 colors, 5 ranks, hand size 5,
    # a batch of 16 observations.
    num_players, num_colors, num_ranks, hand_size = 2, 5, 5, 5
    batch = 16

    key = jax.random.PRNGKey(0)
    k1, k2 = jax.random.split(key)
    # Synthetic "plausible" bitmaps from the (non-tensor) observation solver.
    plausible = (jax.random.uniform(
        k1, (batch, num_players, hand_size, num_colors, num_ranks)) > 0.3
    ).astype(jnp.float32)
    # Varying hand lengths; force at least one short hand so padding is tested.
    hand_lengths = jax.random.randint(
        k2, (batch, num_players), 1, hand_size + 1).astype(jnp.int32)
    hand_lengths = hand_lengths.at[0, 1].set(3)

    # Batched path.
    out_b = card_knowledge_encoder_batched(plausible, hand_lengths)
    out_b = jax.block_until_ready(out_b)
    expected_b = _reference_batched(plausible, hand_lengths)
    dim = num_players * hand_size * num_colors * num_ranks
    assert out_b.shape == (batch, dim)
    assert jnp.allclose(out_b, expected_b), "batched mismatch vs reference"

    # Single-observation module API (B=1 through the same kernel).
    out_s = card_knowledge_encoder(
        plausible[0], hand_lengths[0],
        num_players=num_players, num_colors=num_colors,
        num_ranks=num_ranks, hand_size=hand_size)
    out_s = jax.block_until_ready(out_s)
    assert out_s.shape == (dim,)
    assert jnp.allclose(out_s, expected_b[0]), "single-obs mismatch"

    print("KERNEL_OK")
</pallas_src>

<mosaic_0001>
module attributes {stable_mosaic.version = 11 : i64} {
  func.func @_card_knowledge_kernel(%arg0: i32, %arg1: memref<32x1xi32, #tpu.memory_space<vmem>>, %arg2: memref<32x128xf32, #tpu.memory_space<vmem>>, %arg3: memref<32x128xf32, #tpu.memory_space<vmem>>) attributes {dimension_semantics = [#tpu.dimension_semantics<parallel>], iteration_bounds = array<i64: 1>, scalar_prefetch = 0 : i64, scratch_operands = 0 : i64, tpu.core_type = #tpu.core_type<tc>, window_params = [{transform_indices = @transform_0, window_bounds = array<i64: 32, 1>}, {transform_indices = @transform_1, window_bounds = array<i64: 32, 128>}, {transform_indices = @transform_2, window_bounds = array<i64: 32, 128>}]} {
    %0 = tpu.iota {dimensions = array<i32: 1>} : vector<32x128xi32>
    %c0 = arith.constant 0 : index
    %c0_0 = arith.constant 0 : index
    %1 = vector.load %arg1[%c0, %c0_0] : memref<32x1xi32, #tpu.memory_space<vmem>>, vector<32x1xi32>
    %2 = vector.broadcast %1 : vector<32x1xi32> to vector<32x128xi32>
    %3 = arith.cmpi slt, %0, %2 : vector<32x128xi32>
    %c0_1 = arith.constant 0 : index
    %c0_2 = arith.constant 0 : index
    %4 = vector.load %arg2[%c0_1, %c0_2] : memref<32x128xf32, #tpu.memory_space<vmem>>, vector<32x128xf32>
    %cst = arith.constant 0.000000e+00 : f32
    %5 = vector.broadcast %cst : f32 to vector<32x128xf32>
    %6 = arith.select %3, %4, %5 : vector<32x128xi1>, vector<32x128xf32>
    %c0_3 = arith.constant 0 : index
    %c0_4 = arith.constant 0 : index
    %7 = vector.load %arg3[%c0_3, %c0_4] : memref<32x128xf32, #tpu.memory_space<vmem>>, vector<32x128xf32>
    tpu.vector_store %arg3[%c0_3, %c0_4], %6 {strides = array<i32>} : memref<32x128xf32, #tpu.memory_space<vmem>>, vector<32x128xf32>,
    return
  }
  func.func @transform_0(%arg0: i32) -> (i32, i32) {
    %c0_i32 = arith.constant 0 : i32
    %c0_i32_0 = arith.constant 0 : i32
    return %arg0, %c0_i32 : i32, i32
  }
  func.func @transform_1(%arg0: i32) -> (i32, i32) {
    %c0_i32 = arith.constant 0 : i32
    %c0_i32_0 = arith.constant 0 : i32
    return %arg0, %c0_i32 : i32, i32
  }
  func.func @transform_2(%arg0: i32) -> (i32, i32) {
    %c0_i32 = arith.constant 0 : i32
    %c0_i32_0 = arith.constant 0 : i32
    return %arg0, %c0_i32 : i32, i32
  }
}

</mosaic_0001>

<bundles_post_ra>
// kernel: tpu_custom_call.1
= control target key start
LH: loop header
LB: loop body
LE: loop exit
PB: predicated region body
PF: predicated region fallthrough
CT: control target
= control target key end

     0   :  { %v90_v2 = vmov 0   ;;  %s136_s0 = inlined_call_operand.vmem [shape: s32[32,1], index: 0, kind: input, shape index: {}]   ;;  %s137_s1 = inlined_call_operand.vmem [shape: f32[32,128], index: 1, kind: input, shape index: {}]   ;;  %s138_s2 = inlined_call_operand.hbm [shape: f32[32,128], index: 2, kind: output, shape index: {}]  }
   0x1   :  { %v16_v0 = vld [vmem:[%s136_s0 + $0x10] sm:$0xff]  ;;  %v14_v1 = vld [vmem:[%s136_s0] sm:$0xff]  ;;  %67 = vset.pattern.permute.xlu1 %v90_v2  ;;  %66 = vset.pattern.permute.xlu0 %v90_v2 }
   0x2   :  { %25 = vperm.xlu1 %67, %v16_v0   ;;  %19 = vperm.xlu0 %66, %v14_v1  }
   0x3   :  { %7 = vsyncpa [#allocation3], 0  ;;  %v17_v3 = vld [vmem:[%s136_s0 + $0x18] sm:$0xff]  ;;  %v15_v4 = vld [vmem:[%s136_s0 + $0x8] sm:$0xff]  ;;  %v12_v5 = vlaneseq  ;;  %s91_s21 = smov [#allocation2]  }
   0x4   :  { %v36_v7 = vld [vmem:[%s137_s1 + $0x10] sm:$0xff]  ;;  %v34_v8 = vld [vmem:[%s137_s1] sm:$0xff]  ;;  %s51_s22 = sshll.u32 %s91_s21, 4  ;;  %v37_v13 = vld [vmem:[%s137_s1 + $0x18] sm:$0xff]  ;;  %s52_s22 = int_to_ptr.vmem [resolvable:$true] %s51_s22 }
   0x5   :  { %v13_v6 = vand.u32 127, %v12_v5  ;;  %v35_v14 = vld [vmem:[%s137_s1 + $0x8] sm:$0xff]  ;;  %s68_s26 = scalar_lea.vmem %s52_s22, 512  ;;  %p73_p1 = scmp.lt.s32.totalorder %s52_s22, %s52_s22 }
   0x6   :  { %28 = vperm.xlu1 %67, %v17_v3   ;;  %22 = vperm.xlu0 %66, %v15_v4   ;;  %p69_p0 = scmp.ne.s32.totalorder %s52_s22, %s68_s26  ;;  %p74_p2 = scmp.lt.s32.totalorder %s68_s26, %s68_s26 }
   0x8   :  { %p75_p3 = por %p74_p2, %p73_p1 }
   0xa   :  { %p76_p4 = pnand %p75_p3, %p69_p0 }
  0x7d   :  { %v26_v9 = vpop.permute.xlu1 %25  ;;  %v20_v10 = vpop.permute.xlu0 %19 }
  0x7e   :  { %vm32_vm0 = vcmp.lt.s32.totalorder %v13_v6, %v26_v9  ;;  %vm30_vm1 = vcmp.lt.s32.totalorder %v13_v6, %v20_v10 }
  0x7f   :  { %v40_v11 = vsel %vm32_vm0, %v36_v7, 0.0  ;;  %v38_v12 = vsel %vm30_vm1, %v34_v8, 0.0 }
  0x80   :  { %44 = vst [vmem:[#allocation2 + $0x10] sm:$0xff] %v40_v11  ;;  %42 = vst [vmem:[#allocation2] sm:$0xff] %v38_v12 }
  0x81   :  { %v29_v15 = vpop.permute.xlu1 %28  ;;  %v23_v16 = vpop.permute.xlu0 %22 }
  0x82   :  { %vm33_vm2 = vcmp.lt.s32.totalorder %v13_v6, %v29_v15  ;;  %vm31_vm3 = vcmp.lt.s32.totalorder %v13_v6, %v23_v16 }
  0x83   :  { %v41_v17 = vsel %vm33_vm2, %v37_v13, 0.0  ;;  %v39_v18 = vsel %vm31_vm3, %v35_v14, 0.0 }
  0x84   :  { %45 = vst [vmem:[#allocation2 + $0x18] sm:$0xff] %v41_v17  ;;  %43 = vst [vmem:[#allocation2 + $0x8] sm:$0xff] %v39_v18 }
  0x85   :  { %79 = shalt.err (!%p76_p4)
}
  0x86   :  { %s92_s27 = smov 128   ;;  %s93_s28 = smov 8  }
  0x87   :  { %57 = dma.vmem_to_hbm [thread:$0]  %s52_s22, 512, %s138_s2, [#allocation3], %s92_s27, %s92_s27, %s93_s28  }
  0x88   :  { %88 = dma.done.wait [#allocation3], 512  }
  0x89   :  { %89 = vsyncadd [#allocation3], 4294966784 }
  0x8a   :  { %61 = vsyncpa [#allocation3], 1 }

</bundles_post_ra>
